<compile_context>
chip_gen: v5e
topology: v5e:2x2
jax: 0.10.0
libtpu: 0.0.40
codegen_flags: <defaults>
</compile_context>

<pallas_src>
import functools

import jax
import jax.numpy as jnp
from jax.experimental import pallas as pl
from jax.experimental.pallas import tpu as pltpu


def _ncf_kernel(num_layers,
                eu_gmf_ref, ei_gmf_ref, eu_mlp_ref, ei_mlp_ref,
                w1u_ref, w1i_ref, b1_ref,
                *rest_refs):
    # rest_refs = [w2, b2, ..., wL, bL, wp_gmf, wp_mlp, bp, out_ref]
    n_rest = num_layers - 1
    layer_refs = rest_refs[: 2 * n_rest]
    wp_gmf_ref = rest_refs[2 * n_rest]
    wp_mlp_ref = rest_refs[2 * n_rest + 1]
    bp_ref = rest_refs[2 * n_rest + 2]
    out_ref = rest_refs[2 * n_rest + 3]

    compute_dtype = eu_mlp_ref.dtype

    # ---- MLP branch -----------------------------------------------------
    # First layer: concat([eu, ei]) @ W1 distributed over the split weight,
    # avoiding a lane-axis concatenate of sub-128-lane operands.
    acc = (jnp.dot(eu_mlp_ref[...], w1u_ref[...],
                   preferred_element_type=jnp.float32)
           + jnp.dot(ei_mlp_ref[...], w1i_ref[...],
                     preferred_element_type=jnp.float32)
           + b1_ref[...])
    x = jnp.maximum(acc, 0.0).astype(compute_dtype)

    # Remaining layers (unrolled: shapes shrink each layer, keep LLO visibility).
    for i in range(n_rest):
        w = layer_refs[2 * i][...]
        b = layer_refs[2 * i + 1][...]
        acc = jnp.dot(x, w, preferred_element_type=jnp.float32) + b
        x = jnp.maximum(acc, 0.0).astype(compute_dtype)

    # ---- GMF branch -------------------------------------------------------
    gmf = eu_gmf_ref[...].astype(jnp.float32) * ei_gmf_ref[...].astype(jnp.float32)

    # ---- predict layer ------------------------------------------------------
    # concat([gmf, x]) @ wp == gmf·wp[:F] + x·wp[F:]; computed as a VPU
    # multiply + XLU lane reduction instead of an N=1 MXU matmul.
    pred = (jnp.sum(gmf * wp_gmf_ref[...], axis=-1, keepdims=True)
            + jnp.sum(x.astype(jnp.float32) * wp_mlp_ref[...],
                      axis=-1, keepdims=True)
            + bp_ref[...])
    out_ref[...] = pred


def ncf_forward(user, item, params, *, num_layers,
                tile_b_max=1024, compute_dtype=jnp.bfloat16):
    """NeuMF-end forward. Returns shape (batch,) float32 predictions."""
    factor_num = params["embed_user_GMF"].shape[1]

    # --- plain-JAX glue: embedding row gathers (see TODO at top of file) ---
    eu_gmf = params["embed_user_GMF"][user].astype(compute_dtype)   # (B, F)
    ei_gmf = params["embed_item_GMF"][item].astype(compute_dtype)   # (B, F)
    eu_mlp = params["embed_user_MLP"][user].astype(compute_dtype)   # (B, H)
    ei_mlp = params["embed_item_MLP"][item].astype(compute_dtype)   # (B, H)

    B = eu_gmf.shape[0]

    # --- batch tiling: multiple of 8 sublanes, explicit tail padding --------
    tile_b = min(tile_b_max, max(B, 8))
    tile_b = -(-tile_b // 8) * 8
    b_pad = -(-B // tile_b) * tile_b
    if b_pad != B:
        pad = ((0, b_pad - B), (0, 0))
        eu_gmf = jnp.pad(eu_gmf, pad)
        ei_gmf = jnp.pad(ei_gmf, pad)
        eu_mlp = jnp.pad(eu_mlp, pad)
        ei_mlp = jnp.pad(ei_mlp, pad)
    num_tiles = b_pad // tile_b

    # --- static weight splits in the wrapper (zero-cost slices) ------------
    H = eu_mlp.shape[1]                                   # factor_num * 2**(L-1)
    w1 = params["mlp_w"][0].astype(compute_dtype)         # (2H, H)
    w1u, w1i = w1[:H], w1[H:]
    b1 = params["mlp_b"][0].astype(jnp.float32)           # (1, H)

    weight_args = [w1u, w1i, b1]
    for i in range(1, num_layers):
        weight_args.append(params["mlp_w"][i].astype(compute_dtype))
        weight_args.append(params["mlp_b"][i].astype(jnp.float32))

    wp = params["predict_w"].astype(jnp.float32)          # (2F, 1)
    weight_args.append(wp[:factor_num].reshape(1, factor_num))   # wp_gmf row
    weight_args.append(wp[factor_num:].reshape(1, factor_num))   # wp_mlp row
    weight_args.append(params["predict_b"].astype(jnp.float32))  # (1, 1)

    act_args = [eu_gmf, ei_gmf, eu_mlp, ei_mlp]

    def act_spec(a):
        return pl.BlockSpec((tile_b, a.shape[1]), lambda i: (i, 0))

    def resident_spec(a):
        # Constant index_map -> block stays resident across grid iterations.
        return pl.BlockSpec(a.shape, lambda i: (0, 0))

    in_specs = ([act_spec(a) for a in act_args]
                + [resident_spec(w) for w in weight_args])
    out_spec = pl.BlockSpec((tile_b, 1), lambda i: (i, 0))

    kernel = functools.partial(_ncf_kernel, num_layers)

    out = pl.pallas_call(
        kernel,
        out_shape=jax.ShapeDtypeStruct((b_pad, 1), jnp.float32),
        grid=(num_tiles,),
        in_specs=in_specs,
        out_specs=out_spec,
        compiler_params=pltpu.CompilerParams(
            dimension_semantics=("parallel",),
        ),
    )(*act_args, *weight_args)

    return out[:B, 0]


def _reference_forward(user, item, params, *, num_layers,
                       compute_dtype=jnp.bfloat16):
    """Pure-JAX reference mirroring the kernel's bf16-in / f32-accumulate math."""
    eu_gmf = params["embed_user_GMF"][user].astype(compute_dtype)
    ei_gmf = params["embed_item_GMF"][item].astype(compute_dtype)
    gmf = eu_gmf.astype(jnp.float32) * ei_gmf.astype(jnp.float32)

    eu_mlp = params["embed_user_MLP"][user].astype(compute_dtype)
    ei_mlp = params["embed_item_MLP"][item].astype(compute_dtype)
    x = jnp.concatenate([eu_mlp, ei_mlp], axis=-1)
    for i in range(num_layers):
        w = params["mlp_w"][i].astype(compute_dtype)
        b = params["mlp_b"][i].astype(jnp.float32)
        acc = jnp.dot(x, w, preferred_element_type=jnp.float32) + b
        x = jnp.maximum(acc, 0.0).astype(compute_dtype)

    concat = jnp.concatenate([gmf, x.astype(jnp.float32)], axis=-1)
    pred = concat @ params["predict_w"].astype(jnp.float32) \
        + params["predict_b"].astype(jnp.float32)
    return pred.reshape(-1)


def init_params(key, *, user_num, item_num, factor_num, num_layers):
    """Deterministic synthetic parameters matching the PyTorch module shapes."""
    keys = jax.random.split(key, 6 + 2 * num_layers)
    mlp_dim = factor_num * 2 ** (num_layers - 1)

    params = {
        "embed_user_GMF": 0.01 * jax.random.normal(keys[0], (user_num, factor_num), jnp.float32),
        "embed_item_GMF": 0.01 * jax.random.normal(keys[1], (item_num, factor_num), jnp.float32),
        "embed_user_MLP": 0.01 * jax.random.normal(keys[2], (user_num, mlp_dim), jnp.float32),
        "embed_item_MLP": 0.01 * jax.random.normal(keys[3], (item_num, mlp_dim), jnp.float32),
        "mlp_w": [],
        "mlp_b": [],
    }

    # MLP stack: layer i maps factor_num * 2**(L-i) -> half (xavier-uniform style).
    for i in range(num_layers):
        in_size = factor_num * 2 ** (num_layers - i)
        out_size = in_size // 2
        bound = (6.0 / (in_size + out_size)) ** 0.5
        w = jax.random.uniform(keys[4 + i], (in_size, out_size), jnp.float32,
                               minval=-bound, maxval=bound)
        params["mlp_w"].append(w)                       # stored (in, out) = W^T of PyTorch
        params["mlp_b"].append(jnp.zeros((1, out_size), jnp.float32))

    # Predict layer: NeuMF -> predict_size = 2 * factor_num, out = 1.
    predict_size = factor_num * 2
    bound = (3.0 / predict_size) ** 0.5
    params["predict_w"] = jax.random.uniform(
        keys[4 + num_layers], (predict_size, 1), jnp.float32, minval=-bound, maxval=bound)
    params["predict_b"] = jnp.zeros((1, 1), jnp.float32)
    return params


if __name__ == "__main__":
    user_num = 32
    item_num = 48
    factor_num = 16
    num_layers = 3
    batch = 300            # not a multiple of the tile -> exercises tail padding

    key = jax.random.PRNGKey(0)
    pkey, ukey, ikey = jax.random.split(key, 3)

    params = init_params(pkey, user_num=user_num, item_num=item_num,
                         factor_num=factor_num, num_layers=num_layers)

    user = jax.random.randint(ukey, (batch,), 0, user_num, dtype=jnp.int32)
    item = jax.random.randint(ikey, (batch,), 0, item_num, dtype=jnp.int32)

    # tile_b_max=128 so the demo runs a real multi-step (parallel) grid.
    pred = ncf_forward(user, item, params, num_layers=num_layers, tile_b_max=128)
    pred = jax.block_until_ready(pred)

    ref = _reference_forward(user, item, params, num_layers=num_layers)
    assert pred.shape == (batch,), pred.shape
    assert jnp.allclose(pred, ref, atol=1e-3, rtol=1e-3), (
        float(jnp.max(jnp.abs(pred - ref))))

    print("KERNEL_OK")
</pallas_src>

<mosaic_0001>
module attributes {stable_mosaic.version = 11 : i64} {
  func.func @_ncf_kernel(%arg0: i32, %arg1: memref<128x16xbf16, #tpu.memory_space<vmem>>, %arg2: memref<128x16xbf16, #tpu.memory_space<vmem>>, %arg3: memref<128x64xbf16, #tpu.memory_space<vmem>>, %arg4: memref<128x64xbf16, #tpu.memory_space<vmem>>, %arg5: memref<64x64xbf16, #tpu.memory_space<vmem>>, %arg6: memref<64x64xbf16, #tpu.memory_space<vmem>>, %arg7: memref<1x64xf32, #tpu.memory_space<vmem>>, %arg8: memref<64x32xbf16, #tpu.memory_space<vmem>>, %arg9: memref<1x32xf32, #tpu.memory_space<vmem>>, %arg10: memref<32x16xbf16, #tpu.memory_space<vmem>>, %arg11: memref<1x16xf32, #tpu.memory_space<vmem>>, %arg12: memref<1x16xf32, #tpu.memory_space<vmem>>, %arg13: memref<1x16xf32, #tpu.memory_space<vmem>>, %arg14: memref<1x1xf32, #tpu.memory_space<vmem>>, %arg15: memref<128x1xf32, #tpu.memory_space<vmem>>) attributes {dimension_semantics = [#tpu.dimension_semantics<parallel>], iteration_bounds = array<i64: 3>, scalar_prefetch = 0 : i64, scratch_operands = 0 : i64, tpu.core_type = #tpu.core_type<tc>, window_params = [{transform_indices = @transform_0, window_bounds = array<i64: 128, 16>}, {transform_indices = @transform_1, window_bounds = array<i64: 128, 16>}, {transform_indices = @transform_2, window_bounds = array<i64: 128, 64>}, {transform_indices = @transform_3, window_bounds = array<i64: 128, 64>}, {pipeline_mode = #tpu.pipeline_mode<synchronous>, transform_indices = @transform_4, window_bounds = array<i64: 64, 64>}, {pipeline_mode = #tpu.pipeline_mode<synchronous>, transform_indices = @transform_5, window_bounds = array<i64: 64, 64>}, {pipeline_mode = #tpu.pipeline_mode<synchronous>, transform_indices = @transform_6, window_bounds = array<i64: 1, 64>}, {pipeline_mode = #tpu.pipeline_mode<synchronous>, transform_indices = @transform_7, window_bounds = array<i64: 64, 32>}, {pipeline_mode = #tpu.pipeline_mode<synchronous>, transform_indices = @transform_8, window_bounds = array<i64: 1, 32>}, {pipeline_mode = #tpu.pipeline_mode<synchronous>, transform_indices = @transform_9, window_bounds = array<i64: 32, 16>}, {pipeline_mode = #tpu.pipeline_mode<synchronous>, transform_indices = @transform_10, window_bounds = array<i64: 1, 16>}, {pipeline_mode = #tpu.pipeline_mode<synchronous>, transform_indices = @transform_11, window_bounds = array<i64: 1, 16>}, {pipeline_mode = #tpu.pipeline_mode<synchronous>, transform_indices = @transform_12, window_bounds = array<i64: 1, 16>}, {pipeline_mode = #tpu.pipeline_mode<synchronous>, transform_indices = @transform_13, window_bounds = array<i64: 1, 1>}, {transform_indices = @transform_14, window_bounds = array<i64: 128, 1>}]} {
    %c0 = arith.constant 0 : index
    %c0_0 = arith.constant 0 : index
    %0 = vector.load %arg3[%c0, %c0_0] : memref<128x64xbf16, #tpu.memory_space<vmem>>, vector<128x64xbf16>
    %c0_1 = arith.constant 0 : index
    %c0_2 = arith.constant 0 : index
    %1 = vector.load %arg5[%c0_1, %c0_2] : memref<64x64xbf16, #tpu.memory_space<vmem>>, vector<64x64xbf16>
    %cst = arith.constant dense<0.000000e+00> : vector<128x64xf32>
    %2 = tpu.matmul %0, %1, %cst {dimension_numbers = #tpu.dot_dimension_numbers<[1], [0], [0], [1], [0, 0, 1, 1], [], []>} : vector<128x64xbf16>, vector<64x64xbf16>, vector<128x64xf32> -> vector<128x64xf32>
    %c0_3 = arith.constant 0 : index
    %c0_4 = arith.constant 0 : index
    %3 = vector.load %arg4[%c0_3, %c0_4] : memref<128x64xbf16, #tpu.memory_space<vmem>>, vector<128x64xbf16>
    %c0_5 = arith.constant 0 : index
    %c0_6 = arith.constant 0 : index
    %4 = vector.load %arg6[%c0_5, %c0_6] : memref<64x64xbf16, #tpu.memory_space<vmem>>, vector<64x64xbf16>
    %cst_7 = arith.constant dense<0.000000e+00> : vector<128x64xf32>
    %5 = tpu.matmul %3, %4, %cst_7 {dimension_numbers = #tpu.dot_dimension_numbers<[1], [0], [0], [1], [0, 0, 1, 1], [], []>} : vector<128x64xbf16>, vector<64x64xbf16>, vector<128x64xf32> -> vector<128x64xf32>
    %6 = arith.addf %2, %5 : vector<128x64xf32>
    %c0_8 = arith.constant 0 : index
    %c0_9 = arith.constant 0 : index
    %7 = vector.load %arg7[%c0_8, %c0_9] : memref<1x64xf32, #tpu.memory_space<vmem>>, vector<1x64xf32>
    %8 = vector.broadcast %7 : vector<1x64xf32> to vector<128x64xf32>
    %9 = arith.addf %6, %8 : vector<128x64xf32>
    %cst_10 = arith.constant 0.000000e+00 : f32
    %10 = vector.broadcast %cst_10 : f32 to vector<128x64xf32>
    %11 = arith.maximumf %9, %10 : vector<128x64xf32>
    %12 = arith.truncf %11 : vector<128x64xf32> to vector<128x64xbf16>
    %c0_11 = arith.constant 0 : index
    %c0_12 = arith.constant 0 : index
    %13 = vector.load %arg8[%c0_11, %c0_12] : memref<64x32xbf16, #tpu.memory_space<vmem>>, vector<64x32xbf16>
    %c0_13 = arith.constant 0 : index
    %c0_14 = arith.constant 0 : index
    %14 = vector.load %arg9[%c0_13, %c0_14] : memref<1x32xf32, #tpu.memory_space<vmem>>, vector<1x32xf32>
    %cst_15 = arith.constant dense<0.000000e+00> : vector<128x32xf32>
    %15 = tpu.matmul %12, %13, %cst_15 {dimension_numbers = #tpu.dot_dimension_numbers<[1], [0], [0], [1], [0, 0, 1, 1], [], []>} : vector<128x64xbf16>, vector<64x32xbf16>, vector<128x32xf32> -> vector<128x32xf32>
    %16 = vector.broadcast %14 : vector<1x32xf32> to vector<128x32xf32>
    %17 = arith.addf %15, %16 : vector<128x32xf32>
    %cst_16 = arith.constant 0.000000e+00 : f32
    %18 = vector.broadcast %cst_16 : f32 to vector<128x32xf32>
    %19 = arith.maximumf %17, %18 : vector<128x32xf32>
    %20 = arith.truncf %19 : vector<128x32xf32> to vector<128x32xbf16>
    %c0_17 = arith.constant 0 : index
    %c0_18 = arith.constant 0 : index
    %21 = vector.load %arg10[%c0_17, %c0_18] : memref<32x16xbf16, #tpu.memory_space<vmem>>, vector<32x16xbf16>
    %c0_19 = arith.constant 0 : index
    %c0_20 = arith.constant 0 : index
    %22 = vector.load %arg11[%c0_19, %c0_20] : memref<1x16xf32, #tpu.memory_space<vmem>>, vector<1x16xf32>
    %cst_21 = arith.constant dense<0.000000e+00> : vector<128x16xf32>
    %23 = tpu.matmul %20, %21, %cst_21 {dimension_numbers = #tpu.dot_dimension_numbers<[1], [0], [0], [1], [0, 0, 1, 1], [], []>} : vector<128x32xbf16>, vector<32x16xbf16>, vector<128x16xf32> -> vector<128x16xf32>
    %24 = vector.broadcast %22 : vector<1x16xf32> to vector<128x16xf32>
    %25 = arith.addf %23, %24 : vector<128x16xf32>
    %cst_22 = arith.constant 0.000000e+00 : f32
    %26 = vector.broadcast %cst_22 : f32 to vector<128x16xf32>
    %27 = arith.maximumf %25, %26 : vector<128x16xf32>
    %28 = arith.truncf %27 : vector<128x16xf32> to vector<128x16xbf16>
    %c0_23 = arith.constant 0 : index
    %c0_24 = arith.constant 0 : index
    %29 = vector.load %arg1[%c0_23, %c0_24] : memref<128x16xbf16, #tpu.memory_space<vmem>>, vector<128x16xbf16>
    %30 = arith.extf %29 : vector<128x16xbf16> to vector<128x16xf32>
    %c0_25 = arith.constant 0 : index
    %c0_26 = arith.constant 0 : index
    %31 = vector.load %arg2[%c0_25, %c0_26] : memref<128x16xbf16, #tpu.memory_space<vmem>>, vector<128x16xbf16>
    %32 = arith.extf %31 : vector<128x16xbf16> to vector<128x16xf32>
    %33 = arith.mulf %30, %32 : vector<128x16xf32>
    %c0_27 = arith.constant 0 : index
    %c0_28 = arith.constant 0 : index
    %34 = vector.load %arg12[%c0_27, %c0_28] : memref<1x16xf32, #tpu.memory_space<vmem>>, vector<1x16xf32>
    %35 = vector.broadcast %34 : vector<1x16xf32> to vector<128x16xf32>
    %36 = arith.mulf %33, %35 : vector<128x16xf32>
    %cst_29 = arith.constant dense<0.000000e+00> : vector<128xf32>
    %37 = vector.multi_reduction <add>, %36, %cst_29 [1] : vector<128x16xf32> to vector<128xf32>
    %38 = vector.shape_cast %37 : vector<128xf32> to vector<128x1xf32>
    %39 = arith.extf %28 : vector<128x16xbf16> to vector<128x16xf32>
    %c0_30 = arith.constant 0 : index
    %c0_31 = arith.constant 0 : index
    %40 = vector.load %arg13[%c0_30, %c0_31] : memref<1x16xf32, #tpu.memory_space<vmem>>, vector<1x16xf32>
    %41 = vector.broadcast %40 : vector<1x16xf32> to vector<128x16xf32>
    %42 = arith.mulf %39, %41 : vector<128x16xf32>
    %cst_32 = arith.constant dense<0.000000e+00> : vector<128xf32>
    %43 = vector.multi_reduction <add>, %42, %cst_32 [1] : vector<128x16xf32> to vector<128xf32>
    %44 = vector.shape_cast %43 : vector<128xf32> to vector<128x1xf32>
    %45 = arith.addf %38, %44 : vector<128x1xf32>
    %c0_33 = arith.constant 0 : index
    %c0_34 = arith.constant 0 : index
    %46 = vector.load %arg14[%c0_33, %c0_34] : memref<1x1xf32, #tpu.memory_space<vmem>>, vector<1x1xf32>
    %47 = vector.broadcast %46 : vector<1x1xf32> to vector<128x1xf32>
    %48 = arith.addf %45, %47 : vector<128x1xf32>
    %c0_35 = arith.constant 0 : index
    %c0_36 = arith.constant 0 : index
    %49 = vector.load %arg15[%c0_35, %c0_36] : memref<128x1xf32, #tpu.memory_space<vmem>>, vector<128x1xf32>
    tpu.vector_store %arg15[%c0_35, %c0_36], %48 {strides = array<i32>} : memref<128x1xf32, #tpu.memory_space<vmem>>, vector<128x1xf32>,
    return
  }
  func.func @transform_0(%arg0: i32) -> (i32, i32) {
    %c0_i32 = arith.constant 0 : i32
    %c0_i32_0 = arith.constant 0 : i32
    return %arg0, %c0_i32 : i32, i32
  }
  func.func @transform_1(%arg0: i32) -> (i32, i32) {
    %c0_i32 = arith.constant 0 : i32
    %c0_i32_0 = arith.constant 0 : i32
    return %arg0, %c0_i32 : i32, i32
  }
  func.func @transform_2(%arg0: i32) -> (i32, i32) {
    %c0_i32 = arith.constant 0 : i32
    %c0_i32_0 = arith.constant 0 : i32
    return %arg0, %c0_i32 : i32, i32
  }
  func.func @transform_3(%arg0: i32) -> (i32, i32) {
    %c0_i32 = arith.constant 0 : i32
    %c0_i32_0 = arith.constant 0 : i32
    return %arg0, %c0_i32 : i32, i32
  }
  func.func @transform_4(%arg0: i32) -> (i32, i32) {
    %c0_i32 = arith.constant 0 : i32
    %c0_i32_0 = arith.constant 0 : i32
    %c0_i32_1 = arith.constant 0 : i32
    return %c0_i32, %c0_i32_0 : i32, i32
  }
  func.func @transform_5(%arg0: i32) -> (i32, i32) {
    %c0_i32 = arith.constant 0 : i32
    %c0_i32_0 = arith.constant 0 : i32
    %c0_i32_1 = arith.constant 0 : i32
    return %c0_i32, %c0_i32_0 : i32, i32
  }
  func.func @transform_6(%arg0: i32) -> (i32, i32) {
    %c0_i32 = arith.constant 0 : i32
    %c0_i32_0 = arith.constant 0 : i32
    %c0_i32_1 = arith.constant 0 : i32
    return %c0_i32, %c0_i32_0 : i32, i32
  }
  func.func @transform_7(%arg0: i32) -> (i32, i32) {
    %c0_i32 = arith.constant 0 : i32
    %c0_i32_0 = arith.constant 0 : i32
    %c0_i32_1 = arith.constant 0 : i32
    return %c0_i32, %c0_i32_0 : i32, i32
  }
  func.func @transform_8(%arg0: i32) -> (i32, i32) {
    %c0_i32 = arith.constant 0 : i32
    %c0_i32_0 = arith.constant 0 : i32
    %c0_i32_1 = arith.constant 0 : i32
    return %c0_i32, %c0_i32_0 : i32, i32
  }
  func.func @transform_9(%arg0: i32) -> (i32, i32) {
    %c0_i32 = arith.constant 0 : i32
    %c0_i32_0 = arith.constant 0 : i32
    %c0_i32_1 = arith.constant 0 : i32
    return %c0_i32, %c0_i32_0 : i32, i32
  }
  func.func @transform_10(%arg0: i32) -> (i32, i32) {
    %c0_i32 = arith.constant 0 : i32
    %c0_i32_0 = arith.constant 0 : i32
    %c0_i32_1 = arith.constant 0 : i32
    return %c0_i32, %c0_i32_0 : i32, i32
  }
  func.func @transform_11(%arg0: i32) -> (i32, i32) {
    %c0_i32 = arith.constant 0 : i32
    %c0_i32_0 = arith.constant 0 : i32
    %c0_i32_1 = arith.constant 0 : i32
    return %c0_i32, %c0_i32_0 : i32, i32
  }
  func.func @transform_12(%arg0: i32) -> (i32, i32) {
    %c0_i32 = arith.constant 0 : i32
    %c0_i32_0 = arith.constant 0 : i32
    %c0_i32_1 = arith.constant 0 : i32
    return %c0_i32, %c0_i32_0 : i32, i32
  }
  func.func @transform_13(%arg0: i32) -> (i32, i32) {
    %c0_i32 = arith.constant 0 : i32
    %c0_i32_0 = arith.constant 0 : i32
    %c0_i32_1 = arith.constant 0 : i32
    return %c0_i32, %c0_i32_0 : i32, i32
  }
  func.func @transform_14(%arg0: i32) -> (i32, i32) {
    %c0_i32 = arith.constant 0 : i32
    %c0_i32_0 = arith.constant 0 : i32
    return %arg0, %c0_i32 : i32, i32
  }
}

</mosaic_0001>

<bundles_post_ra>
// kernel: tpu_custom_call.1
= control target key start
LH: loop header
LB: loop body
LE: loop exit
PB: predicated region body
PF: predicated region fallthrough
CT: control target
= control target key end

     0   :  { %s1921_s15 = smov 0   ;;  %s2296_s0 = inlined_call_operand.vmem [shape: bf16[384,16], index: 0, kind: input, shape index: {}]   ;;  %s2297_s1 = inlined_call_operand.vmem [shape: bf16[384,16], index: 1, kind: input, shape index: {}]   ;;  %s2298_s2 = inlined_call_operand.vmem [shape: bf16[384,64], index: 2, kind: input, shape index: {}]   ;;  %s2299_s3 = inlined_call_operand.vmem [shape: bf16[384,64], index: 3, kind: input, shape index: {}]   ;;  %s2300_s4 = inlined_call_operand.vmem [shape: bf16[64,64], index: 4, kind: input, shape index: {}]   ;;  %s2301_s5 = inlined_call_operand.vmem [shape: bf16[64,64], index: 5, kind: input, shape index: {}]   ;;  %s2302_s6 = inlined_call_operand.vmem [shape: f32[1,64], index: 6, kind: input, shape index: {}]   ;;  %s2303_s7 = inlined_call_operand.vmem [shape: bf16[64,32], index: 7, kind: input, shape index: {}]   ;;  %s2304_s8 = inlined_call_operand.vmem [shape: f32[1,32], index: 8, kind: input, shape index: {}]   ;;  %s2305_s9 = inlined_call_operand.vmem [shape: bf16[32,16], index: 9, kind: input, shape index: {}]   ;;  %s2306_s10 = inlined_call_operand.vmem [shape: f32[1,16], index: 10, kind: input, shape index: {}]   ;;  %s2307_s11 = inlined_call_operand.vmem [shape: f32[1,16], index: 11, kind: input, shape index: {}]   ;;  %s2308_s12 = inlined_call_operand.vmem [shape: f32[1,16], index: 12, kind: input, shape index: {}]   ;;  %s2309_s13 = inlined_call_operand.<no memory space> [shape: f32[1,1], index: 13, kind: input, shape index: {}]   ;;  %s2310_s14 = inlined_call_operand.vmem [shape: f32[384,1], index: 14, kind: output, shape index: {}]  }
   0x1   :  { %v19_v0 = vstv %s2309_s13 }
   0x2   :  { %20 = vst [vmem:[#allocation2] sm:$0x1] %v19_v0 }
   0x3 LB: > { %s1544_s16 = sadd.s32 4294967295, %s1841_s15   ;;  %p1548_p0 = scmp.ge.s32.totalorder %s1841_s15, 1  ;;  %s1841_s15 = sphi %s1921_s15, %s26_s15  }
   0x4   : > { %p448_p1 = scmp.lt.s32.totalorder %s1841_s15, 4 }
   0x6   : > { %p449_p2 = pnand %p1548_p0, %p448_p1 }
   0x7   : > { %s1549_s20 = sshll.u32 (!%p449_p2), %s1544_s16, 4 }
   0x8   : > { %452 = sbr.rel (%p449_p2) target bundleno = 702 (0x2be), region = 76  ;;  %p510_p3 = scmp.lt.s32.totalorder (!%p449_p2), %s1549_s20, 47 }
   0xd   : > { %v1736_v1 = vld [vmem:[%s2301_s5 + $0x18] sm:$0xff]  ;;  %v1735_v3 = vld [vmem:[%s2301_s5 + $0x10] sm:$0xff]  ;;  %s2312_s20 = smov (!%p510_p3, %s1549_s20), 47  ;;  %v1734_v5 = vld [vmem:[%s2301_s5 + $0x8] sm:$0xff]  ;;  %vm652_vm0 = vcmask 523264   ;;  %vm1060_vm1 = vcmask 261120  }
   0xe   : > { %v1724_v2 = vld [vmem:[%s2300_s4 + $0x18] sm:$0xff]  ;;  %681 = vmatpush.bf16.msra.mxu0 %v1736_v1  ;;  %v1723_v4 = vld [vmem:[%s2300_s4 + $0x10] sm:$0xff]  ;;  %v1722_v6 = vld [vmem:[%s2300_s4 + $0x8] sm:$0xff]  ;;  %s1950_s29 = sshll.u32 %s2312_s20, 2  ;;  %vm1266_vm2 = vcmask 130048   ;;  %vm1435_vm3 = vcmask 7168  }
   0xf   : > { %818 = vmatpush.bf16.msra.mxu1 %v1724_v2  ;;  %v1733_v7 = vld [vmem:[%s2301_s5] sm:$0xff]  ;;  %s1962_s21 = scalar_lea.vmem %s2299_s3, %s1950_s29  ;;  %s1968_s24 = scalar_lea.vmem %s2298_s2, %s1950_s29  ;;  %v1740_v23 = vld [vmem:[%s2303_s7 + $0x18] sm:$0xff]  ;;  %v1739_v24 = vld [vmem:[%s2303_s7 + $0x10] sm:$0xff] }
  0x10   : > { %v1721_v8 = vld [vmem:[%s2300_s4] sm:$0xff]  ;;  %v1726_v11 = vld [vmem:[%s1962_s21 + $0x8] sm:$0xff]  ;;  %v1727_v13 = vld [vmem:[%s1962_s21 + $0x10] sm:$0xff]  ;;  %971 = vmatpush.bf16.msra.mxu2 %v1740_v23  ;;  %s2072_s30 = scalar_lea.vmem %s2296_s0, %s1950_s29  ;;  %s2078_s18 = scalar_lea.vmem %s2297_s1, %s1950_s29 }
  0x11   : > { %v1725_v9 = vld [vmem:[%s1962_s21] sm:$0xff]  ;;  %v1714_v12 = vld [vmem:[%s1968_s24 + $0x8] sm:$0xff]  ;;  %v1715_v14 = vld [vmem:[%s1968_s24 + $0x10] sm:$0xff] }
  0x12   : > { %682 = vmatpush.bf16.msra.mxu0 %v1735_v3  ;;  %v1713_v10 = vld [vmem:[%s1968_s24] sm:$0xff]  ;;  %v1728_v15 = vld [vmem:[%s1962_s21 + $0x18] sm:$0xff]  ;;  %v1730_v19 = vld [vmem:[%s1962_s21 + $0x28] sm:$0xff] }
  0x13   : > { %819 = vmatpush.bf16.msra.mxu1 %v1723_v4  ;;  %v1716_v16 = vld [vmem:[%s1968_s24 + $0x18] sm:$0xff]  ;;  %v1729_v17 = vld [vmem:[%s1962_s21 + $0x20] sm:$0xff]  ;;  %v1718_v20 = vld [vmem:[%s1968_s24 + $0x28] sm:$0xff] }
  0x14   : > { %v1717_v18 = vld [vmem:[%s1968_s24 + $0x20] sm:$0xff]  ;;  %v1731_v21 = vld [vmem:[%s1962_s21 + $0x30] sm:$0xff]  ;;  %972 = vmatpush.bf16.msra.mxu2 %v1739_v24  ;;  %v1738_v25 = vld [vmem:[%s2303_s7 + $0x8] sm:$0xff] }
  0x15   : > { %v1719_v22 = vld [vmem:[%s1968_s24 + $0x30] sm:$0xff]  ;;  %v1737_v26 = vld [vmem:[%s2303_s7] sm:$0xff]  ;;  %v1732_v27 = vld [vmem:[%s1962_s21 + $0x38] sm:$0xff] }
  0x16   : > { %683 = vmatpush.bf16.msra.mxu0 %v1734_v5  ;;  %v1720_v28 = vld [vmem:[%s1968_s24 + $0x38] sm:$0xff]  ;;  %v2017_v32 = vld [vmem:[%s2302_s6] ss:$0 sm:$0xff]  ;;  %s1558_s24 = sshll.u32 %s2312_s20, 3 }
  0x17   : > { %820 = vmatpush.bf16.msra.mxu1 %v1722_v6  ;;  %s2229_s27 = scalar_lea.vmem %s2310_s14, %s1558_s24 }
  0x18   : > { %973 = vmatpush.bf16.msra.mxu2 %v1738_v25 }
  0x1a   : > { %684 = vmatpush.bf16.msra.mxu0 %v1733_v7 }
  0x1b   : > { %821 = vmatpush.bf16.msra.mxu1 %v1721_v8 }
  0x1c   : > { %974 = vmatpush.bf16.msra.mxu2 %v1737_v26 }
  0x1d   : > { %1607 = vmatmul.msk.bf16.vlgmr.msra.gmra.mxu0 %vm652_vm0, %v1725_v9 }
  0x1e   : > { %1663 = vmatmul.msk.bf16.vlgmr.msra.gmra.mxu1 %vm652_vm0, %v1713_v10 }
  0x2d   : > { %1608 = vmatmul.msk.bf16.gmra.mxu0 %vm652_vm0, %v1726_v11 }
  0x2e   : > { %1664 = vmatmul.msk.bf16.gmra.mxu1 %vm652_vm0, %v1714_v12 }
  0x3d   : > { %1609 = vmatmul.msk.bf16.gmra.mxu0 %vm652_vm0, %v1727_v13 }
  0x3e   : > { %1665 = vmatmul.msk.bf16.gmra.mxu1 %vm652_vm0, %v1715_v14 }
  0x4d   : > { %1610 = vmatmul.msk.bf16.gmra.mxu0 %vm652_vm0, %v1728_v15 }
  0x4e   : > { %1666 = vmatmul.msk.bf16.gmra.mxu1 %vm652_vm0, %v1716_v16 }
  0x5d   : > { %1611 = vmatmul.msk.bf16.gmra.mxu0 %vm652_vm0, %v1729_v17 }
  0x5e   : > { %1667 = vmatmul.msk.bf16.gmra.mxu1 %vm652_vm0, %v1717_v18 }
  0x6d   : > { %1612 = vmatmul.msk.bf16.gmra.mxu0 %vm652_vm0, %v1730_v19 }
  0x6e   : > { %1668 = vmatmul.msk.bf16.gmra.mxu1 %vm652_vm0, %v1718_v20 }
  0x7d   : > { %1613 = vmatmul.msk.bf16.gmra.mxu0 %vm652_vm0, %v1731_v21 }
  0x7e   : > { %1669 = vmatmul.msk.bf16.gmra.mxu1 %vm652_vm0, %v1719_v22 }
  0x8d   : > { %1614 = vmatmul.msk.bf16.gmra.mxu0 %vm652_vm0, %v1732_v27 }
  0x8e   : > { %1670 = vmatmul.msk.bf16.gmra.mxu1 %vm652_vm0, %v1720_v28 }
  0x9a   : > { %v686_v29 = vpop.f32.mrf.mxu0 }
  0x9b   : > { %v823_v30 = vpop.f32.mrf.mxu1 }
  0x9c   : > { %v824_v31 = vadd.f32 %v823_v30, %v686_v29 }
  0x9e   : > { %v867_v35 = vadd.f32 %v2017_v32, %v824_v31 }
  0xa0   : > { %v883_v38 = vmax.f32 %v867_v35, 0.0 }
  0xa2   : > { %v688_v33 = vpop.f32.mrf.mxu0 }
  0xa3   : > { %v825_v34 = vpop.f32.mrf.mxu1 }
  0xa4   : > { %v826_v36 = vadd.f32 %v825_v34, %v688_v33 }
  0xa6   : > { %v868_v37 = vadd.f32 %v2017_v32, %v826_v36 }
  0xa8   : > { %v884_v39 = vmax.f32 %v868_v37, 0.0 }
  0xaa   : > { %v899_v40 = vpack.c.bf16 %v884_v39, %v883_v38  ;;  %v691_v41 = vpop.f32.mrf.mxu0 }
  0xab   : > { %v828_v42 = vpop.f32.mrf.mxu1 }
  0xac   : > { %1687 = vmatmul.msk.bf16.vlgmr.msra.gmra.mxu2 %vm652_vm0, %v899_v40  ;;  %v829_v43 = vadd.f32 %v828_v42, %v691_v41 }
  0xae   : > { %v869_v46 = vadd.f32 %v2017_v32, %v829_v43 }
  0xb0   : > { %v885_v49 = vmax.f32 %v869_v46, 0.0 }
  0xb2   : > { %v693_v44 = vpop.f32.mrf.mxu0 }
  0xb3   : > { %v830_v45 = vpop.f32.mrf.mxu1 }
  0xb4   : > { %v831_v47 = vadd.f32 %v830_v45, %v693_v44 }
  0xb6   : > { %v870_v48 = vadd.f32 %v2017_v32, %v831_v47 }
  0xb8   : > { %v886_v50 = vmax.f32 %v870_v48, 0.0 }
  0xba   : > { %v900_v51 = vpack.c.bf16 %v886_v50, %v885_v49  ;;  %v696_v52 = vpop.f32.mrf.mxu0 }
  0xbb   : > { %v833_v53 = vpop.f32.mrf.mxu1 }
  0xbc   : > { %1688 = vmatmul.msk.bf16.gmra.mxu2 %vm652_vm0, %v900_v51  ;;  %v834_v54 = vadd.f32 %v833_v53, %v696_v52  ;;  %v1742_v51 = vld [vmem:[%s2305_s9 + $0x8] sm:$0xff] }
  0xbd   : > { %1091 = vmatpush.bf16.msra.mxu3 %v1742_v51 }
  0xbe   : > { %v871_v57 = vadd.f32 %v2017_v32, %v834_v54 }
  0xc0   : > { %v887_v60 = vmax.f32 %v871_v57, 0.0 }
  0xc2   : > { %v698_v55 = vpop.f32.mrf.mxu0 }
  0xc3   : > { %v835_v56 = vpop.f32.mrf.mxu1 }
  0xc4   : > { %v836_v58 = vadd.f32 %v835_v56, %v698_v55  ;;  %v1741_v55 = vld [vmem:[%s2305_s9] sm:$0xff] }
  0xc5   : > { %1092 = vmatpush.bf16.msra.mxu3 %v1741_v55 }
  0xc6   : > { %v872_v59 = vadd.f32 %v2017_v32, %v836_v58  ;;  %v2052_v58 = vld [vmem:[%s2304_s8] ss:$0 sm:$0xff] }
  0xc8   : > { %v888_v61 = vmax.f32 %v872_v59, 0.0 }
  0xca   : > { %v901_v62 = vpack.c.bf16 %v888_v61, %v887_v60  ;;  %v701_v63 = vpop.f32.mrf.mxu0 }
  0xcb   : > { %v838_v0 = vpop.f32.mrf.mxu1 }
  0xcc   : > { %1689 = vmatmul.msk.bf16.gmra.mxu2 %vm652_vm0, %v901_v62  ;;  %v839_v1 = vadd.f32 %v838_v0, %v701_v63 }
  0xce   : > { %v873_v4 = vadd.f32 %v2017_v32, %v839_v1 }
  0xd0   : > { %v889_v7 = vmax.f32 %v873_v4, 0.0 }
  0xd2   : > { %v703_v2 = vpop.f32.mrf.mxu0 }
  0xd3   : > { %v840_v3 = vpop.f32.mrf.mxu1 }
  0xd4   : > { %v841_v5 = vadd.f32 %v840_v3, %v703_v2 }
  0xd6   : > { %v874_v6 = vadd.f32 %v2017_v32, %v841_v5 }
  0xd8   : > { %v890_v8 = vmax.f32 %v874_v6, 0.0 }
  0xda   : > { %v902_v9 = vpack.c.bf16 %v890_v8, %v889_v7  ;;  %v706_v10 = vpop.f32.mrf.mxu0 }
  0xdb   : > { %v843_v11 = vpop.f32.mrf.mxu1 }
  0xdc   : > { %1690 = vmatmul.msk.bf16.gmra.mxu2 %vm652_vm0, %v902_v9  ;;  %v844_v12 = vadd.f32 %v843_v11, %v706_v10 }
  0xde   : > { %v875_v15 = vadd.f32 %v2017_v32, %v844_v12 }
  0xe0   : > { %v891_v18 = vmax.f32 %v875_v15, 0.0 }
  0xe2   : > { %v708_v13 = vpop.f32.mrf.mxu0 }
  0xe3   : > { %v845_v14 = vpop.f32.mrf.mxu1 }
  0xe4   : > { %v846_v16 = vadd.f32 %v845_v14, %v708_v13 }
  0xe6   : > { %v876_v17 = vadd.f32 %v2017_v32, %v846_v16 }
  0xe8   : > { %v892_v19 = vmax.f32 %v876_v17, 0.0 }
  0xea   : > { %v903_v20 = vpack.c.bf16 %v892_v19, %v891_v18  ;;  %v711_v21 = vpop.f32.mrf.mxu0 }
  0xeb   : > { %v848_v22 = vpop.f32.mrf.mxu1 }
  0xec   : > { %1691 = vmatmul.msk.bf16.gmra.mxu2 %vm652_vm0, %v903_v20  ;;  %v849_v23 = vadd.f32 %v848_v22, %v711_v21 }
  0xee   : > { %v877_v26 = vadd.f32 %v2017_v32, %v849_v23 }
  0xf0   : > { %v893_v29 = vmax.f32 %v877_v26, 0.0 }
  0xf2   : > { %v713_v24 = vpop.f32.mrf.mxu0 }
  0xf3   : > { %v850_v25 = vpop.f32.mrf.mxu1 }
  0xf4   : > { %v851_v27 = vadd.f32 %v850_v25, %v713_v24 }
  0xf6   : > { %v878_v28 = vadd.f32 %v2017_v32, %v851_v27 }
  0xf8   : > { %v894_v30 = vmax.f32 %v878_v28, 0.0  ;;  %v1807_v28 = vld [vmem:[%s2072_s30 + $0x8] sm:$0xff]  }
  0xfa   : > { %v904_v31 = vpack.c.bf16 %v894_v30, %v893_v29  ;;  %v716_v33 = vpop.f32.mrf.mxu0  ;;  %v1814_v29 = vld [vmem:[%s2078_s18 + $0x8] sm:$0xff]   ;;  %v1749_v30 = vunpack.c.l.bf16 %v1807_v28 }
  0xfb   : > { %v853_v34 = vpop.f32.mrf.mxu1 }
  0xfc   : > { %1692 = vmatmul.msk.bf16.gmra.mxu2 %vm652_vm0, %v904_v31  ;;  %v854_v35 = vadd.f32 %v853_v34, %v716_v33  ;;  %v1781_v31 = vunpack.c.l.bf16 %v1814_v29 }
  0xfe   : > { %v879_v38 = vadd.f32 %v2017_v32, %v854_v35  ;;  %v1232_v34 = vmul.f32 %v1781_v31, %v1749_v30  ;;  %v2086_v35 = vld [vmem:[%s2307_s11] ss:$0 sm:$0xff] }
 0x100   : > { %v895_v41 = vmax.f32 %v879_v38, 0.0 }
 0x102   : > { %v718_v36 = vpop.f32.mrf.mxu0 }
 0x103   : > { %v855_v37 = vpop.f32.mrf.mxu1 }
 0x104   : > { %v856_v39 = vadd.f32 %v855_v37, %v718_v36  ;;  %v1252_v36 = vmul.f32 %v2086_v35, %v1232_v34 }
 0x106   : > { %v880_v40 = vadd.f32 %v2017_v32, %v856_v39  ;;  %v1273_v37 = vsel %vm1266_vm2, %v1252_v36, 0.0  ;;  %v1808_v39 = vld [vmem:[%s2072_s30 + $0x10] sm:$0xff]  }
 0x107   : > { %1274 = vadd.xlane.f32.xlu1 %v1273_v37 }
 0x108   : > { %v896_v42 = vmax.f32 %v880_v40, 0.0  ;;  %v1815_v40 = vld [vmem:[%s2078_s18 + $0x10] sm:$0xff]  }
 0x10a   : > { %v905_v43 = vpack.c.bf16 %v896_v42, %v895_v41  ;;  %v721_v44 = vpop.f32.mrf.mxu0  ;;  %v1744_v41 = vld [vmem:[%s2072_s30] sm:$0xff]   ;;  %v1753_v42 = vunpack.c.l.bf16 %v1808_v39 }
 0x10b   : > { %v858_v45 = vpop.f32.mrf.mxu1 }
 0x10c   : > { %1693 = vmatmul.msk.bf16.gmra.mxu2 %vm652_vm0, %v905_v43  ;;  %v859_v46 = vadd.f32 %v858_v45, %v721_v44  ;;  %v1785_v43 = vunpack.c.l.bf16 %v1815_v40  ;;  %v1750_v44 = vunpack.c.h.bf16 %v1807_v28  ;;  %v1782_v45 = vunpack.c.h.bf16 %v1814_v29 }
 0x10e   : > { %v881_v49 = vadd.f32 %v2017_v32, %v859_v46  ;;  %v1776_v46 = vld [vmem:[%s2078_s18] sm:$0xff]   ;;  %v1234_v51 = vmul.f32 %v1785_v43, %v1753_v42 }
 0x110   : > { %v897_v53 = vmax.f32 %v881_v49, 0.0  ;;  %v1777_v49 = vunpack.c.l.bf16 %v1776_v46 }
 0x112   : > { %v723_v47 = vpop.f32.mrf.mxu0 }
 0x113   : > { %v860_v48 = vpop.f32.mrf.mxu1 }
 0x114   : > { %v861_v50 = vadd.f32 %v860_v48, %v723_v47  ;;  %v1745_v48 = vunpack.c.l.bf16 %v1744_v41 }
 0x116   : > { %v882_v52 = vadd.f32 %v2017_v32, %v861_v50 }
 0x118   : > { %v898_v54 = vmax.f32 %v882_v52, 0.0  ;;  %v1233_v52 = vmul.f32 %v1782_v45, %v1750_v44  ;;  %v1812_v44 = vld [vmem:[%s2072_s30 + $0x30] sm:$0xff]  }
 0x119   : > { %v1819_v45 = vld [vmem:[%s2078_s18 + $0x30] sm:$0xff]  }
 0x11a   : > { %v906_v56 = vpack.c.bf16 %v898_v54, %v897_v53  ;;  %v1230_v53 = vmul.f32 %v1777_v49, %v1745_v48  ;;  %v1770_v48 = vunpack.c.h.bf16 %v1812_v44  ;;  %v1802_v49 = vunpack.c.h.bf16 %v1819_v45 }
 0x11c   : > { %1694 = vmatmul.msk.bf16.gmra.mxu2 %vm652_vm0, %v906_v56  ;;  %v1254_v56 = vmul.f32 %v2086_v35, %v1234_v51 }
 0x12f   : > { %v976_v57 = vpop.f32.mrf.mxu2 }
 0x130   : > { %v977_v59 = vadd.f32 %v2052_v58, %v976_v57  ;;  %v1253_v57 = vmul.f32 %v2086_v35, %v1233_v52 }
 0x132   : > { %v1016_v61 = vmax.f32 %v977_v59, 0.0  ;;  %v1250_v59 = vmul.f32 %v2086_v35, %v1230_v53 }
 0x137   : > { %v978_v32 = vpop.f32.mrf.mxu2 }
 0x138   : > { %v979_v60 = vadd.f32 %v2052_v58, %v978_v32 }
 0x13a   : > { %v1017_v62 = vmax.f32 %v979_v60, 0.0  ;;  %v1279_v60 = vsel %vm1266_vm2, %v1254_v56, 0.0 }
 0x13b   : > { %1280 = vadd.xlane.f32.xlu2 %v1279_v60 }
 0x13c   : > { %v1032_v63 = vpack.c.bf16 %v1017_v62, %v1016_v61  ;;  %v1276_v61 = vsel %vm1266_vm2, %v1253_v57, 0.0  ;;  %v1267_v62 = vsel %vm1266_vm2, %v1250_v59, 0.0 }
 0x13d   : > { %1277 = vadd.xlane.f32.xlu1 %v1276_v61  ;;  %1268 = vadd.xlane.f32.xlu0 %v1267_v62 }
 0x13e   : > { %1703 = vmatmul.msk.bf16.vlgmr.msra.gmra.mxu3 %vm1060_vm1, %v1032_v63  ;;  %v1809_v63 = vld [vmem:[%s2072_s30 + $0x18] sm:$0xff]  }
 0x13f   : > { %v981_v0 = vpop.f32.mrf.mxu2 }
 0x140   : > { %v982_v1 = vadd.f32 %v2052_v58, %v981_v0  ;;  %v1816_v0 = vld [vmem:[%s2078_s18 + $0x18] sm:$0xff]  }
 0x142   : > { %v1018_v4 = vmax.f32 %v982_v1, 0.0  ;;  %v1754_v1 = vunpack.c.h.bf16 %v1808_v39 }
 0x147   : > { %v983_v2 = vpop.f32.mrf.mxu2 }
 0x148   : > { %v984_v3 = vadd.f32 %v2052_v58, %v983_v2  ;;  %v1786_v2 = vunpack.c.h.bf16 %v1815_v40 }
 0x14a   : > { %v1019_v5 = vmax.f32 %v984_v3, 0.0  ;;  %v1758_v3 = vunpack.c.h.bf16 %v1809_v63 }
 0x14c   : > { %v1033_v6 = vpack.c.bf16 %v1019_v5, %v1018_v4  ;;  %v1790_v4 = vunpack.c.h.bf16 %v1816_v0  ;;  %v1810_v5 = vld [vmem:[%s2072_s30 + $0x20] sm:$0xff]  }
 0x14d   : > { %v1762_v51 = vunpack.c.h.bf16 %v1810_v5 }
 0x14e   : > { %1704 = vmatmul.msk.bf16.gmra.mxu3 %vm1060_vm1, %v1033_v6  ;;  %v1817_v6 = vld [vmem:[%s2078_s18 + $0x20] sm:$0xff]  }
 0x14f   : > { %v986_v7 = vpop.f32.mrf.mxu2  ;;  %v1794_v52 = vunpack.c.h.bf16 %v1817_v6 }
 0x150   : > { %v987_v8 = vadd.f32 %v2052_v58, %v986_v7  ;;  %v1811_v7 = vld [vmem:[%s2072_s30 + $0x28] sm:$0xff]  }
 0x152   : > { %v1020_v11 = vmax.f32 %v987_v8, 0.0 }
 0x157   : > { %v988_v9 = vpop.f32.mrf.mxu2 }
 0x158   : > { %v989_v10 = vadd.f32 %v2052_v58, %v988_v9  ;;  %v1746_v9 = vunpack.c.h.bf16 %v1744_v41 }
 0x15a   : > { %v1021_v12 = vmax.f32 %v989_v10, 0.0  ;;  %v1778_v10 = vunpack.c.h.bf16 %v1776_v46  ;;  %v1766_v46 = vunpack.c.h.bf16 %v1811_v7 }
 0x15c   : > { %v1034_v13 = vpack.c.bf16 %v1021_v12, %v1020_v11  ;;  %v1761_v11 = vunpack.c.l.bf16 %v1810_v5  ;;  %v1793_v12 = vunpack.c.l.bf16 %v1817_v6 }
 0x15e   : > { %1705 = vmatmul.msk.bf16.gmra.mxu3 %vm1060_vm1, %v1034_v13  ;;  %v1818_v13 = vld [vmem:[%s2078_s18 + $0x28] sm:$0xff]  }
 0x15f   : > { %v991_v14 = vpop.f32.mrf.mxu2 }
 0x160   : > { %v992_v15 = vadd.f32 %v2052_v58, %v991_v14  ;;  %v1235_v14 = vmul.f32 %v1786_v2, %v1754_v1 }
 0x162   : > { %v1022_v18 = vmax.f32 %v992_v15, 0.0  ;;  %v1237_v15 = vmul.f32 %v1790_v4, %v1758_v3  ;;  %v1769_v3 = vunpack.c.l.bf16 %v1812_v44  ;;  %v1801_v4 = vunpack.c.l.bf16 %v1819_v45 }
 0x167   : > { %v993_v16 = vpop.f32.mrf.mxu2 }
 0x168   : > { %v994_v17 = vadd.f32 %v2052_v58, %v993_v16  ;;  %v1765_v16 = vunpack.c.l.bf16 %v1811_v7 }
 0x16a   : > { %v1023_v19 = vmax.f32 %v994_v17, 0.0  ;;  %v1231_v17 = vmul.f32 %v1778_v10, %v1746_v9 }
 0x16c   : > { %v1035_v20 = vpack.c.bf16 %v1023_v19, %v1022_v18  ;;  %v1797_v18 = vunpack.c.l.bf16 %v1818_v13  ;;  %v1757_v19 = vunpack.c.l.bf16 %v1809_v63  ;;  %v1813_v63 = vld [vmem:[%s2072_s30 + $0x38] sm:$0xff]  }
 0x16d   : > { %v1773_v1 = vunpack.c.l.bf16 %v1813_v63 }
 0x16e   : > { %1706 = vmatmul.msk.bf16.gmra.mxu3 %vm1060_vm1, %v1035_v20  ;;  %v1255_v20 = vmul.f32 %v2086_v35, %v1235_v14 }
 0x16f   : > { %v996_v21 = vpop.f32.mrf.mxu2 }
 0x170   : > { %v997_v22 = vadd.f32 %v2052_v58, %v996_v21  ;;  %v1257_v21 = vmul.f32 %v2086_v35, %v1237_v15 }
 0x172   : > { %v1024_v25 = vmax.f32 %v997_v22, 0.0  ;;  %v1238_v22 = vmul.f32 %v1793_v12, %v1761_v11 }
 0x174   : > { %v1258_v31 = vmul.f32 %v2086_v35, %v1238_v22 }
 0x176   : > { %v1291_v40 = vsel %vm1266_vm2, %v1258_v31, 0.0 }
 0x177   : > { %v998_v23 = vpop.f32.mrf.mxu2 }
 0x178   : > { %v999_v24 = vadd.f32 %v2052_v58, %v998_v23  ;;  %v1789_v23 = vunpack.c.l.bf16 %v1816_v0  ;;  %v1820_v0 = vld [vmem:[%s2078_s18 + $0x38] sm:$0xff]  }
 0x179   : > { %v1805_v2 = vunpack.c.l.bf16 %v1820_v0 }
 0x17a   : > { %v1025_v26 = vmax.f32 %v999_v24, 0.0  ;;  %v1251_v24 = vmul.f32 %v2086_v35, %v1231_v17  ;;  %v1236_v28 = vmul.f32 %v1789_v23, %v1757_v19  ;;  %v1806_v17 = vunpack.c.h.bf16 %v1820_v0 }
 0x17b   : > { %v1244_v7 = vmul.f32 %v1805_v2, %v1773_v1 }
 0x17c   : > { %v1036_v27 = vpack.c.bf16 %v1025_v26, %v1024_v25  ;;  %v1240_v25 = vmul.f32 %v1797_v18, %v1765_v16  ;;  %v1282_v26 = vsel %vm1266_vm2, %v1255_v20, 0.0  ;;  %v1270_v29 = vsel %vm1266_vm2, %v1251_v24, 0.0  ;;  %v2146_v20 = vld [vmem:[%s2306_s10] ss:$0 sm:$0xff] }
 0x17d   : > { %1283 = vadd.xlane.f32.xlu2 %v1282_v26  ;;  %1271 = vadd.xlane.f32.xlu0 %v1270_v29  ;;  %v1256_v36 = vmul.f32 %v2086_v35, %v1236_v28  ;;  %v1264_v11 = vmul.f32 %v2086_v35, %v1244_v7  ;;  %v1774_v16 = vunpack.c.h.bf16 %v1813_v63 }
 0x17e   : > { %1707 = vmatmul.msk.bf16.gmra.mxu3 %vm1060_vm1, %v1036_v27  ;;  %v1288_v27 = vsel %vm1266_vm2, %v1257_v21, 0.0 }
 0x17f   : > { %v1001_v33 = vpop.f32.mrf.mxu2  ;;  %1289 = vadd.xlane.f32.xlu1 %v1288_v27  ;;  %v1285_v42 = vsel %vm1266_vm2, %v1256_v36, 0.0  ;;  %v1309_v14 = vsel %vm1266_vm2, %v1264_v11, 0.0 }
 0x180   : > { %v1002_v38 = vadd.f32 %v2052_v58, %v1001_v33  ;;  %v1260_v33 = vmul.f32 %v2086_v35, %v1240_v25  ;;  %v2152_v25 = vld [vmem:[%s2308_s12] ss:$0 sm:$0xff] }
 0x182   : > { %v1026_v54 = vmax.f32 %v1002_v38, 0.0  ;;  %v1297_v41 = vsel %vm1266_vm2, %v1260_v33, 0.0 }
 0x185   : > { %1292 = vadd.xlane.f32.xlu2 %v1291_v40  ;;  %1286 = vadd.xlane.f32.xlu0 %v1285_v42 }
 0x187   : > { %v1003_v47 = vpop.f32.mrf.mxu2  ;;  %1298 = vadd.xlane.f32.xlu1 %v1297_v41 }
 0x188   : > { %v1004_v50 = vadd.f32 %v2052_v58, %v1003_v47  ;;  %v1798_v47 = vunpack.c.h.bf16 %v1818_v13 }
 0x18a   : > { %v1027_v55 = vmax.f32 %v1004_v50, 0.0  ;;  %v1241_v53 = vmul.f32 %v1798_v47, %v1766_v46 }
 0x18c   : > { %v1037_v32 = vpack.c.bf16 %v1027_v55, %v1026_v54  ;;  %v1243_v54 = vmul.f32 %v1802_v49, %v1770_v48  ;;  %v1239_v55 = vmul.f32 %v1794_v52, %v1762_v51  ;;  %v1261_v56 = vmul.f32 %v2086_v35, %v1241_v53 }
 0x18e   : > { %1708 = vmatmul.msk.bf16.gmra.mxu3 %vm1060_vm1, %v1037_v32  ;;  %v1263_v57 = vmul.f32 %v2086_v35, %v1243_v54  ;;  %v1259_v59 = vmul.f32 %v2086_v35, %v1239_v55  ;;  %v1300_v32 = vsel %vm1266_vm2, %v1261_v56, 0.0 }
 0x18f   : > { %v1006_v8 = vpop.f32.mrf.mxu2  ;;  %1301 = vadd.xlane.f32.xlu2 %v1300_v32 }
 0x190   : > { %v1007_v30 = vadd.f32 %v2052_v58, %v1006_v8  ;;  %v1306_v60 = vsel %vm1266_vm2, %v1263_v57, 0.0  ;;  %v1294_v62 = vsel %vm1266_vm2, %v1259_v59, 0.0  ;;  %v1242_v8 = vmul.f32 %v1801_v4, %v1769_v3 }
 0x191   : > { %1307 = vadd.xlane.f32.xlu1 %v1306_v60  ;;  %1295 = vadd.xlane.f32.xlu0 %v1294_v62 }
 0x192   : > { %v1028_v38 = vmax.f32 %v1007_v30, 0.0  ;;  %v1262_v12 = vmul.f32 %v2086_v35, %v1242_v8 }
 0x194   : > { %v1303_v15 = vsel %vm1266_vm2, %v1262_v12, 0.0 }
 0x197   : > { %v1008_v34 = vpop.f32.mrf.mxu2  ;;  %1310 = vadd.xlane.f32.xlu2 %v1309_v14 }
 0x198   : > { %v1009_v37 = vadd.f32 %v2052_v58, %v1008_v34 }
 0x199   : > { %1304 = vadd.xlane.f32.xlu0 %v1303_v15 }
 0x19a   : > { %v1029_v39 = vmax.f32 %v1009_v37, 0.0 }
 0x19c   : > { %v1038_v43 = vpack.c.bf16 %v1029_v39, %v1028_v38 }
 0x19e   : > { %1709 = vmatmul.msk.bf16.gmra.mxu3 %vm1060_vm1, %v1038_v43 }
 0x19f   : > { %v1011_v50 = vpop.f32.mrf.mxu2 }
 0x1a0   : > { %v1012_v61 = vadd.f32 %v2052_v58, %v1011_v50 }
 0x1a2   : > { %v1030_v9 = vmax.f32 %v1012_v61, 0.0 }
 0x1a7   : > { %v1013_v5 = vpop.f32.mrf.mxu2 }
 0x1a8   : > { %v1014_v6 = vadd.f32 %v2052_v58, %v1013_v5  ;;  %v1245_v58 = vmul.f32 %v1806_v17, %v1774_v16 }
 0x1aa   : > { %v1031_v10 = vmax.f32 %v1014_v6, 0.0  ;;  %v1265_v18 = vmul.f32 %v2086_v35, %v1245_v58 }
 0x1ac   : > { %v1039_v13 = vpack.c.bf16 %v1031_v10, %v1030_v9  ;;  %v1312_v19 = vsel %vm1266_vm2, %v1265_v18, 0.0 }
 0x1ad   : > { %1313 = vadd.xlane.f32.xlu0 %v1312_v19 }
 0x1ae   : > { %1710 = vmatmul.msk.bf16.gmra.mxu3 %vm1060_vm1, %v1039_v13 }
 0x1c1   : > { %v1094_v21 = vpop.f32.mrf.mxu3 }
 0x1c2   : > { %v1095_v22 = vadd.f32 %v2146_v20, %v1094_v21 }
 0x1c4   : > { %v1134_v23 = vmax.f32 %v1095_v22, 0.0 }
 0x1c6   : > { %v1150_v24 = vpack.c.bf16 %v1134_v23, %v1134_v23 }
 0x1c8   : > { %v1315_v26 = vunpack.c.l.bf16 %v1150_v24 }
 0x1c9   : > { %v1096_v35 = vpop.f32.mrf.mxu3 }
 0x1ca   : > { %v1097_v27 = vadd.f32 %v2146_v20, %v1096_v35  ;;  %v1335_v28 = vmul.f32 %v2152_v25, %v1315_v26  ;;  %v2181_v35 = vpop.xlane.xlu1 %1274 }
 0x1cc   : > { %v1135_v29 = vmax.f32 %v1097_v27, 0.0  ;;  %v1351_v30 = vsel %vm1266_vm2, %v1335_v28, 0.0 }
 0x1cd   : > { %1352 = vadd.xlane.f32.xlu1 %v1351_v30 }
 0x1ce   : > { %v1151_v31 = vpack.c.bf16 %v1135_v29, %v1135_v29 }
 0x1d0   : > { %v1316_v33 = vunpack.c.l.bf16 %v1151_v31 }
 0x1d1   : > { %v1099_v34 = vpop.f32.mrf.mxu3 }
 0x1d2   : > { %v1100_v36 = vadd.f32 %v2146_v20, %v1099_v34  ;;  %v1336_v37 = vmul.f32 %v2152_v25, %v1316_v33  ;;  %v1269_v34 = vpop.xlane.xlu0 %1268 }
 0x1d4   : > { %v1136_v38 = vmax.f32 %v1100_v36, 0.0  ;;  %v1354_v39 = vsel %vm1266_vm2, %v1336_v37, 0.0  ;;  %v2186_v37 = vpop.xlane.xlu2 %1280 }
 0x1d5   : > { %1355 = vadd.xlane.f32.xlu2 %v1354_v39  ;;  %v2188_v39 = vpop.xlane.xlu1 %1277 }
 0x1d6   : > { %v1152_v40 = vpack.c.bf16 %v1136_v38, %v1136_v38 }
 0x1d8   : > { %v1317_v41 = vunpack.c.l.bf16 %v1152_v40 }
 0x1d9   : > { %v1101_v42 = vpop.f32.mrf.mxu3 }
 0x1da   : > { %v1102_v43 = vadd.f32 %v2146_v20, %v1101_v42  ;;  %v1337_v44 = vmul.f32 %v2152_v25, %v1317_v41 }
 0x1dc   : > { %v1137_v45 = vmax.f32 %v1102_v43, 0.0  ;;  %v1357_v46 = vsel %vm1266_vm2, %v1337_v44, 0.0 }
 0x1dd   : > { %1358 = vadd.xlane.f32.xlu0 %v1357_v46 }
 0x1de   : > { %v1153_v47 = vpack.c.bf16 %v1137_v45, %v1137_v45 }
 0x1e0   : > { %v1318_v48 = vunpack.c.l.bf16 %v1153_v47 }
 0x1e1   : > { %v1104_v49 = vpop.f32.mrf.mxu3 }
 0x1e2   : > { %v1105_v50 = vadd.f32 %v2146_v20, %v1104_v49  ;;  %v1338_v51 = vmul.f32 %v2152_v25, %v1318_v48 }
 0x1e4   : > { %v1138_v52 = vmax.f32 %v1105_v50, 0.0  ;;  %v1360_v53 = vsel %vm1266_vm2, %v1338_v51, 0.0 }
 0x1e5   : > { %1361 = vadd.xlane.f32.xlu1 %v1360_v53 }
 0x1e6   : > { %v1154_v54 = vpack.c.bf16 %v1138_v52, %v1138_v52 }
 0x1e8   : > { %v1319_v55 = vunpack.c.l.bf16 %v1154_v54 }
 0x1e9   : > { %v1106_v56 = vpop.f32.mrf.mxu3 }
 0x1ea   : > { %v1107_v57 = vadd.f32 %v2146_v20, %v1106_v56  ;;  %v1339_v59 = vmul.f32 %v2152_v25, %v1319_v55 }
 0x1ec   : > { %v1139_v32 = vmax.f32 %v1107_v57, 0.0  ;;  %v1363_v60 = vsel %vm1266_vm2, %v1339_v59, 0.0 }
 0x1ed   : > { %1364 = vadd.xlane.f32.xlu2 %v1363_v60 }
 0x1ee   : > { %v1155_v61 = vpack.c.bf16 %v1139_v32, %v1139_v32 }
 0x1f0   : > { %v1320_v62 = vunpack.c.l.bf16 %v1155_v61  ;;  %v1272_v46 = vpop.xlane.xlu0 %1271  ;;  %v2193_v48 = vpop.xlane.xlu2 %1283 }
 0x1f1   : > { %v1109_v63 = vpop.f32.mrf.mxu3 }
 0x1f2   : > { %v1110_v0 = vadd.f32 %v2146_v20, %v1109_v63  ;;  %v1340_v1 = vmul.f32 %v2152_v25, %v1320_v62  ;;  %v2197_v52 = vpop.xlane.xlu1 %1289 }
 0x1f4   : > { %v1140_v2 = vmax.f32 %v1110_v0, 0.0  ;;  %v1366_v3 = vsel %vm1266_vm2, %v1340_v1, 0.0 }
 0x1f5   : > { %1367 = vadd.xlane.f32.xlu0 %v1366_v3 }
 0x1f6   : > { %v1156_v4 = vpack.c.bf16 %v1140_v2, %v1140_v2 }
 0x1f8   : > { %v1321_v5 = vunpack.c.l.bf16 %v1156_v4  ;;  %v2200_v57 = vpop.xlane.xlu0 %1286  ;;  %v2204_v61 = vpop.xlane.xlu2 %1292 }
 0x1f9   : > { %v1111_v6 = vpop.f32.mrf.mxu3 }
 0x1fa   : > { %v1112_v7 = vadd.f32 %v2146_v20, %v1111_v6  ;;  %v1341_v8 = vmul.f32 %v2152_v25, %v1321_v5  ;;  %v2207_v0 = vpop.xlane.xlu1 %1298 }
 0x1fc   : > { %v1141_v9 = vmax.f32 %v1112_v7, 0.0  ;;  %v1369_v10 = vsel %vm1266_vm2, %v1341_v8, 0.0 }
 0x1fd   : > { %1370 = vadd.xlane.f32.xlu1 %v1369_v10 }
 0x1fe   : > { %v1157_v11 = vpack.c.bf16 %v1141_v9, %v1141_v9 }
 0x200   : > { %v1322_v12 = vunpack.c.l.bf16 %v1157_v11 }
 0x201   : > { %v1114_v13 = vpop.f32.mrf.mxu3 }
 0x202   : > { %v1115_v14 = vadd.f32 %v2146_v20, %v1114_v13  ;;  %v1342_v15 = vmul.f32 %v2152_v25, %v1322_v12  ;;  %v2214_v9 = vpop.xlane.xlu2 %1301 }
 0x204   : > { %v1142_v16 = vmax.f32 %v1115_v14, 0.0  ;;  %v1372_v17 = vsel %vm1266_vm2, %v1342_v15, 0.0  ;;  %v2211_v6 = vpop.xlane.xlu0 %1295  ;;  %v2216_v11 = vpop.xlane.xlu1 %1307 }
 0x205   : > { %1373 = vadd.xlane.f32.xlu2 %v1372_v17 }
 0x206   : > { %v1158_v58 = vpack.c.bf16 %v1142_v16, %v1142_v16 }
 0x208   : > { %v1323_v18 = vunpack.c.l.bf16 %v1158_v58 }
 0x209   : > { %v1116_v19 = vpop.f32.mrf.mxu3 }
 0x20a   : > { %v1117_v21 = vadd.f32 %v2146_v20, %v1116_v19  ;;  %v1343_v22 = vmul.f32 %v2152_v25, %v1323_v18  ;;  %v2221_v19 = vpop.xlane.xlu2 %1310 }
 0x20c   : > { %v1143_v23 = vmax.f32 %v1117_v21, 0.0  ;;  %v1375_v24 = vsel %vm1266_vm2, %v1343_v22, 0.0  ;;  %v1305_v58 = vpop.xlane.xlu0 %1304  ;;  %v2224_v21 = vld [vmem:[#allocation2] ss:$0 sm:$0xff] }
 0x20d   : > { %1376 = vadd.xlane.f32.xlu0 %v1375_v24 }
 0x20e   : > { %v1159_v26 = vpack.c.bf16 %v1143_v23, %v1143_v23 }
 0x210   : > { %v1324_v27 = vunpack.c.l.bf16 %v1159_v26 }
 0x211   : > { %v1119_v28 = vpop.f32.mrf.mxu3 }
 0x212   : > { %v1120_v29 = vadd.f32 %v2146_v20, %v1119_v28  ;;  %v1344_v30 = vmul.f32 %v2152_v25, %v1324_v27 }
 0x214   : > { %v1144_v31 = vmax.f32 %v1120_v29, 0.0  ;;  %v1378_v33 = vsel %vm1266_vm2, %v1344_v30, 0.0 }
 0x215   : > { %1379 = vadd.xlane.f32.xlu1 %v1378_v33 }
 0x216   : > { %v1160_v36 = vpack.c.bf16 %v1144_v31, %v1144_v31 }
 0x218   : > { %v1325_v38 = vunpack.c.l.bf16 %v1160_v36 }
 0x219   : > { %v1121_v40 = vpop.f32.mrf.mxu3 }
 0x21a   : > { %v1122_v41 = vadd.f32 %v2146_v20, %v1121_v40  ;;  %v1345_v42 = vmul.f32 %v2152_v25, %v1325_v38 }
 0x21c   : > { %v1145_v43 = vmax.f32 %v1122_v41, 0.0  ;;  %v1381_v44 = vsel %vm1266_vm2, %v1345_v42, 0.0 }
 0x21d   : > { %1382 = vadd.xlane.f32.xlu2 %v1381_v44 }
 0x21e   : > { %v1161_v45 = vpack.c.bf16 %v1145_v43, %v1145_v43 }
 0x220   : > { %v1326_v47 = vunpack.c.l.bf16 %v1161_v45  ;;  %v1314_v28 = vpop.xlane.xlu0 %1313 }
 0x221   : > { %v1124_v49 = vpop.f32.mrf.mxu3 }
 0x222   : > { %v1125_v50 = vadd.f32 %v2146_v20, %v1124_v49  ;;  %v1346_v51 = vmul.f32 %v2152_v25, %v1326_v47 }
 0x224   : > { %v1146_v53 = vmax.f32 %v1125_v50, 0.0  ;;  %v1384_v54 = vsel %vm1266_vm2, %v1346_v51, 0.0 }
 0x225   : > { %1385 = vadd.xlane.f32.xlu0 %v1384_v54 }
 0x226   : > { %v1162_v55 = vpack.c.bf16 %v1146_v53, %v1146_v53 }
 0x228   : > { %v1327_v56 = vunpack.c.l.bf16 %v1162_v55 }
 0x229   : > { %v1126_v59 = vpop.f32.mrf.mxu3 }
 0x22a   : > { %v1127_v32 = vadd.f32 %v2146_v20, %v1126_v59  ;;  %v1347_v60 = vmul.f32 %v2152_v25, %v1327_v56 }
 0x22c   : > { %v1147_v62 = vmax.f32 %v1127_v32, 0.0  ;;  %v1387_v63 = vsel %vm1266_vm2, %v1347_v60, 0.0 }
 0x22d   : > { %1388 = vadd.xlane.f32.xlu1 %v1387_v63 }
 0x22e   : > { %v1163_v1 = vpack.c.bf16 %v1147_v62, %v1147_v62 }
 0x230   : > { %v1328_v2 = vunpack.c.l.bf16 %v1163_v1 }
 0x231   : > { %v1129_v3 = vpop.f32.mrf.mxu3 }
 0x232   : > { %v1130_v4 = vadd.f32 %v2146_v20, %v1129_v3  ;;  %v1348_v5 = vmul.f32 %v2152_v25, %v1328_v2 }
 0x234   : > { %v1148_v7 = vmax.f32 %v1130_v4, 0.0  ;;  %v1390_v8 = vsel %vm1266_vm2, %v1348_v5, 0.0 }
 0x235   : > { %1391 = vadd.xlane.f32.xlu2 %v1390_v8 }
 0x236   : > { %v1164_v10 = vpack.c.bf16 %v1148_v7, %v1148_v7 }
 0x238   : > { %v1329_v12 = vunpack.c.l.bf16 %v1164_v10 }
 0x239   : > { %v1131_v13 = vpop.f32.mrf.mxu3 }
 0x23a   : > { %v1132_v14 = vadd.f32 %v2146_v20, %v1131_v13  ;;  %v1349_v15 = vmul.f32 %v2152_v25, %v1329_v12 }
 0x23c   : > { %v1149_v16 = vmax.f32 %v1132_v14, 0.0  ;;  %v1393_v17 = vsel %vm1266_vm2, %v1349_v15, 0.0 }
 0x23d   : > { %1394 = vadd.xlane.f32.xlu0 %v1393_v17 }
 0x23e   : > { %v1165_v18 = vpack.c.bf16 %v1149_v16, %v1149_v16 }
 0x240   : > { %v1330_v22 = vunpack.c.l.bf16 %v1165_v18  ;;  %v1353_v23 = vpop.xlane.xlu1 %1352 }
 0x241   : > { %v1399_v24 = vadd.f32 %v1353_v23, %v1269_v34 }
 0x242   : > { %v1350_v20 = vmul.f32 %v2152_v25, %v1330_v22 }
 0x243   : > { %v1419_v26 = vadd.f32 %v2224_v21, %v1399_v24 }
 0x244   : > { %v1396_v27 = vsel %vm1266_vm2, %v1350_v20, 0.0 }
 0x245   : > { %1436 = vst.msk [vmem:[%s2229_s27] sm:$0xff] %vm1435_vm3, %v1419_v26  ;;  %1397 = vadd.xlane.f32.xlu1 %v1396_v27 }
 0x248   : > { %v1356_v29 = vpop.xlane.xlu2 %1355 }
 0x249   : > { %v1400_v30 = vadd.f32 %v1356_v29, %v1272_v46 }
 0x24b   : > { %v1420_v31 = vadd.f32 %v2224_v21, %v1400_v30 }
 0x24d   : > { %1437 = vst.msk [vmem:[%s2229_s27 + $0x8] sm:$0xff] %vm1435_vm3, %v1420_v31 }
 0x250   : > { %v1359_v33 = vpop.xlane.xlu0 %1358 }
 0x251   : > { %v1401_v25 = vadd.f32 %v1359_v33, %v2181_v35 }
 0x253   : > { %v1421_v34 = vadd.f32 %v2224_v21, %v1401_v25 }
 0x255   : > { %1438 = vst.msk [vmem:[%s2229_s27 + $0x10] sm:$0xff] %vm1435_vm3, %v1421_v34 }
 0x258   : > { %v1362_v36 = vpop.xlane.xlu1 %1361 }
 0x259   : > { %v1402_v38 = vadd.f32 %v1362_v36, %v2188_v39 }
 0x25b   : > { %v1422_v40 = vadd.f32 %v2224_v21, %v1402_v38 }
 0x25d   : > { %1439 = vst.msk [vmem:[%s2229_s27 + $0x18] sm:$0xff] %vm1435_vm3, %v1422_v40 }
 0x260   : > { %v1365_v41 = vpop.xlane.xlu2 %1364 }
 0x261   : > { %v1403_v42 = vadd.f32 %v1365_v41, %v2186_v37 }
 0x263   : > { %v1423_v43 = vadd.f32 %v2224_v21, %v1403_v42 }
 0x265   : > { %1440 = vst.msk [vmem:[%s2229_s27 + $0x20] sm:$0xff] %vm1435_vm3, %v1423_v43 }
 0x268   : > { %v1368_v35 = vpop.xlane.xlu0 %1367 }
 0x269   : > { %v1404_v44 = vadd.f32 %v1368_v35, %v2193_v48 }
 0x26b   : > { %v1424_v45 = vadd.f32 %v2224_v21, %v1404_v44 }
 0x26d   : > { %1441 = vst.msk [vmem:[%s2229_s27 + $0x28] sm:$0xff] %vm1435_vm3, %v1424_v45 }
 0x270   : > { %v1371_v39 = vpop.xlane.xlu1 %1370 }
 0x271   : > { %v1405_v46 = vadd.f32 %v1371_v39, %v2200_v57 }
 0x273   : > { %v1425_v47 = vadd.f32 %v2224_v21, %v1405_v46 }
 0x275   : > { %1442 = vst.msk [vmem:[%s2229_s27 + $0x30] sm:$0xff] %vm1435_vm3, %v1425_v47 }
 0x278   : > { %v1374_v37 = vpop.xlane.xlu2 %1373 }
 0x279   : > { %v1406_v49 = vadd.f32 %v1374_v37, %v2197_v52 }
 0x27b   : > { %v1426_v50 = vadd.f32 %v2224_v21, %v1406_v49 }
 0x27d   : > { %1443 = vst.msk [vmem:[%s2229_s27 + $0x38] sm:$0xff] %vm1435_vm3, %v1426_v50 }
 0x280   : > { %v1377_v48 = vpop.xlane.xlu0 %1376 }
 0x281   : > { %v1407_v51 = vadd.f32 %v1377_v48, %v2204_v61 }
 0x283   : > { %v1427_v53 = vadd.f32 %v2224_v21, %v1407_v51 }
 0x285   : > { %1444 = vst.msk [vmem:[%s2229_s27 + $0x40] sm:$0xff] %vm1435_vm3, %v1427_v53 }
 0x288   : > { %v1380_v54 = vpop.xlane.xlu1 %1379 }
 0x289   : > { %v1408_v55 = vadd.f32 %v1380_v54, %v2211_v6 }
 0x28b   : > { %v1428_v56 = vadd.f32 %v2224_v21, %v1408_v55 }
 0x28d   : > { %1445 = vst.msk [vmem:[%s2229_s27 + $0x48] sm:$0xff] %vm1435_vm3, %v1428_v56 }
 0x290   : > { %v1383_v52 = vpop.xlane.xlu2 %1382 }
 0x291   : > { %v1409_v57 = vadd.f32 %v1383_v52, %v2207_v0 }
 0x293   : > { %v1429_v59 = vadd.f32 %v2224_v21, %v1409_v57 }
 0x295   : > { %1446 = vst.msk [vmem:[%s2229_s27 + $0x50] sm:$0xff] %vm1435_vm3, %v1429_v59 }
 0x298   : > { %v1386_v32 = vpop.xlane.xlu0 %1385 }
 0x299   : > { %v1410_v60 = vadd.f32 %v1386_v32, %v2214_v9 }
 0x29b   : > { %v1430_v61 = vadd.f32 %v2224_v21, %v1410_v60 }
 0x29d   : > { %1447 = vst.msk [vmem:[%s2229_s27 + $0x58] sm:$0xff] %vm1435_vm3, %v1430_v61 }
 0x2a0   : > { %v1389_v62 = vpop.xlane.xlu1 %1388 }
 0x2a1   : > { %v1411_v63 = vadd.f32 %v1389_v62, %v1305_v58 }
 0x2a3   : > { %v1431_v1 = vadd.f32 %v2224_v21, %v1411_v63 }
 0x2a5   : > { %1448 = vst.msk [vmem:[%s2229_s27 + $0x60] sm:$0xff] %vm1435_vm3, %v1431_v1 }
 0x2a8   : > { %v1392_v0 = vpop.xlane.xlu2 %1391 }
 0x2a9   : > { %v1412_v2 = vadd.f32 %v1392_v0, %v2216_v11 }
 0x2ab   : > { %v1432_v3 = vadd.f32 %v2224_v21, %v1412_v2 }
 0x2ad   : > { %1449 = vst.msk [vmem:[%s2229_s27 + $0x68] sm:$0xff] %vm1435_vm3, %v1432_v3 }
 0x2b0   : > { %v1395_v4 = vpop.xlane.xlu0 %1394 }
 0x2b1   : > { %v1413_v5 = vadd.f32 %v1395_v4, %v2221_v19 }
 0x2b3   : > { %v1433_v6 = vadd.f32 %v2224_v21, %v1413_v5 }
 0x2b5   : > { %1450 = vst.msk [vmem:[%s2229_s27 + $0x70] sm:$0xff] %vm1435_vm3, %v1433_v6 }
 0x2b8   : > { %v1398_v7 = vpop.xlane.xlu1 %1397 }
 0x2b9   : > { %v1414_v8 = vadd.f32 %v1398_v7, %v1314_v28 }
 0x2bb   : > { %v1434_v9 = vadd.f32 %v2224_v21, %v1414_v8 }
 0x2bd   : > { %1451 = vst.msk [vmem:[%s2229_s27 + $0x78] sm:$0xff] %vm1435_vm3, %v1434_v9 }
 0x2be PF: > { %s26_s15 = sadd.s32 1, %s1841_s15  }
 0x2bf   : > { %p23_p4 = scmp.ge.s32.totalorder %s26_s15, 5  }
 0x2c1   :  { %25 = sbr.rel (!%p23_p4) target bundleno = 3 (0x3), region = 115 }

</bundles_post_ra>
